<compile_context>
chip_gen: v7x
topology: tpu7x:2x2x1
jax: 0.10.0
libtpu: 0.0.40
codegen_flags: <defaults>
</compile_context>

<pallas_src>
import functools

import numpy as np
import jax
import jax.numpy as jnp
from jax.experimental import pallas as pl
from jax.experimental.pallas import tpu as pltpu

# ---- Kaldi fbank constants (defaults of kaldi fbank @ 16 kHz) ----
SAMPLE_RATE = 16000
FRAME_LEN = 400        # 25 ms
FRAME_SHIFT = 160      # 10 ms
NFFT = 512             # next pow2 of 400
NFREQ = 256            # bins 0..255; Nyquist bin (256) has zero mel weight -> dropped
NMEL = 80
NMEL_PAD = 128         # pad mel bins to 128 lanes for a dense output store
PREEMPH = 0.97
EPS = 1.1920929e-07    # float32 epsilon (Kaldi energy floor)

TF_MAX = 1024          # frames per grid step: ~8-9 MiB VMEM incl. double
                       # buffers + f32 intermediates -> fits v5e's 16 MiB
                       # default scoped limit; amortizes per-step overhead.
COMPUTE_DTYPE = jnp.bfloat16   # MXU-native operands, f32 accumulation.
                               # Set to jnp.float32 for an exact-f32 path
                               # (bf16 PCM ~8 mantissa bits; ~1e-2 log-mel dev).


def _round_up(x: int, m: int) -> int:
    return -(-x // m) * m


def fbank_kernel(frames_ref, dft_ref, mel_ref, out_ref):
    # frames_ref: (TF, FRAME_LEN)   raw (normalized) PCM frames
    # dft_ref:    (FRAME_LEN, 2*NFREQ) fused [cos | sin] basis; the 32768 PCM
    #             scale, DC removal, pre-emphasis and Povey window are all
    #             linear along the 400-sample axis and are pre-folded into it.
    # mel_ref:    (NFREQ, NMEL_PAD) triangular mel filterbank (padded cols zero)
    spec = jnp.dot(frames_ref[...], dft_ref[...],
                   preferred_element_type=jnp.float32)        # (TF, 2*NFREQ) f32
    re = spec[:, :NFREQ]                                      # 128-aligned slices
    im = spec[:, NFREQ:]
    power = re * re + im * im                                 # (TF, NFREQ) f32

    mel_e = jnp.dot(power.astype(mel_ref.dtype), mel_ref[...],
                    preferred_element_type=jnp.float32)       # (TF, NMEL_PAD)
    # padded mel columns are zero -> log(EPS), sliced off in the wrapper
    out_ref[...] = jnp.log(jnp.maximum(mel_e, EPS))


@functools.lru_cache(maxsize=None)
def _make_params_np():
    """Deterministic fused-DFT basis and mel filterbank (built once, float64)."""
    n = np.arange(FRAME_LEN, dtype=np.float64)

    # povey window
    win = (0.5 - 0.5 * np.cos(2.0 * np.pi * n / (FRAME_LEN - 1))) ** 0.85

    # Linear preprocessing chain acting on a column frame vector v:
    #   v -> 32768*v -> remove DC -> pre-emphasis -> window
    dc = np.eye(FRAME_LEN) - np.full((FRAME_LEN, FRAME_LEN), 1.0 / FRAME_LEN)
    pre = np.eye(FRAME_LEN)
    pre[np.arange(1, FRAME_LEN), np.arange(FRAME_LEN - 1)] = -PREEMPH
    pre[0, 0] = 1.0 - PREEMPH                # Kaldi: x[0] -= 0.97 * x[0]
    A = 32768.0 * (win[:, None] * (pre @ dc))          # (400, 400)

    # DFT bases (frames implicitly zero-padded to NFFT; only first 400 rows
    # matter).  Fold preprocessing: frame_row @ (A^T C) == (A frame)^T C.
    k = np.arange(NFREQ, dtype=np.float64)
    ang = -2.0 * np.pi * np.outer(n, k) / NFFT          # (400, 256)
    dft = np.concatenate([A.T @ np.cos(ang), A.T @ np.sin(ang)], axis=1)  # (400, 512)

    # Kaldi-scale triangular mel filterbank (low=20 Hz, high=Nyquist).  The
    # Nyquist FFT bin (index 256) sits exactly on the last filter's right edge
    # -> zero weight, so restricting to 256 bins is exact.
    def hz2mel(f):
        return 1127.0 * np.log(1.0 + f / 700.0)

    mel_pts = np.linspace(hz2mel(20.0), hz2mel(SAMPLE_RATE / 2.0), NMEL + 2)
    fft_mel = hz2mel(np.arange(NFREQ) * SAMPLE_RATE / NFFT)
    fb = np.zeros((NFREQ, NMEL_PAD), np.float64)
    for m in range(NMEL):
        left, center, right = mel_pts[m], mel_pts[m + 1], mel_pts[m + 2]
        up = (fft_mel - left) / (center - left)
        dn = (right - fft_mel) / (right - center)
        fb[:, m] = np.maximum(0.0, np.minimum(up, dn))
    # TODO(synk): exact Kaldi MelBanks bin-edge rounding differs slightly from
    # this standard triangular construction; semantics (shapes/dtypes) match.
    # TODO(synk): no dither applied (assumes the wrapped frontend used dither=0).

    return dft.astype(np.float32), fb.astype(np.float32)


# Built once at import; baked into the jitted trace as constants.
_DFT_NP, _FB_NP = _make_params_np()


@jax.jit
def kaldi_fbank(pcm: jnp.ndarray) -> jnp.ndarray:
    """pcm: (B, S) float32, normalized to [-1, 1].  Returns (B, T, 80) float32."""
    B, S = pcm.shape
    assert S >= FRAME_LEN, "signal shorter than one frame"
    num_frames = 1 + (S - FRAME_LEN) // FRAME_SHIFT

    # framing (snip_edges=True) — gather in (jitted) JAX glue.  The pcm*32768
    # scale is folded into the DFT basis, so no extra pass over the waveform.
    wav = pcm.astype(COMPUTE_DTYPE)
    idx = (np.arange(num_frames)[:, None] * FRAME_SHIFT
           + np.arange(FRAME_LEN)[None, :])
    frames = wav[:, idx].reshape(B * num_frames, FRAME_LEN)

    F = B * num_frames
    # Frame tile: multiple of 16 (bf16 sublane pack), capped at TF_MAX, and
    # additionally capped at ~half the (rounded) work so the grid has >= 2
    # steps whenever possible — lets v7x megacore shard the parallel axis.
    F16 = _round_up(F, 16)
    tf = min(TF_MAX, max(16, _round_up(F16 // 2, 16)))
    F_pad = _round_up(F, tf)
    frames = jnp.pad(frames, ((0, F_pad - F), (0, 0)))

    dft = jnp.asarray(_DFT_NP, COMPUTE_DTYPE)
    fb = jnp.asarray(_FB_NP, COMPUTE_DTYPE)

    out = pl.pallas_call(
        fbank_kernel,
        out_shape=jax.ShapeDtypeStruct((F_pad, NMEL_PAD), jnp.float32),
        grid_spec=pltpu.PrefetchScalarGridSpec(
            num_scalar_prefetch=0,
            grid=(F_pad // tf,),
            in_specs=[
                pl.BlockSpec((tf, FRAME_LEN), lambda i: (i, 0)),
                # Constant-index blocks: pipeline fetches them once and keeps
                # them resident (400 KiB + 64 KiB of VMEM).
                pl.BlockSpec((FRAME_LEN, 2 * NFREQ), lambda i: (0, 0)),
                pl.BlockSpec((NFREQ, NMEL_PAD), lambda i: (0, 0)),
            ],
            out_specs=pl.BlockSpec((tf, NMEL_PAD), lambda i: (i, 0)),
        ),
        compiler_params=pltpu.CompilerParams(
            dimension_semantics=("parallel",)),
    )(frames, dft, fb)

    # Slice/reshape fuses into the consumer under jit; lane width stays 128
    # inside the kernel so stores are unmasked.
    return out[:F, :NMEL].reshape(B, num_frames, NMEL)


if __name__ == "__main__":
    key = jax.random.PRNGKey(0)
    B = 2
    num_frames = 8
    S = FRAME_LEN + (num_frames - 1) * FRAME_SHIFT   # 1520 samples (~95 ms)
    pcm = jax.random.uniform(key, (B, S), jnp.float32, minval=-1.0, maxval=1.0)

    feats = kaldi_fbank(pcm)
    feats = jax.block_until_ready(feats)
    assert feats.shape == (B, num_frames, NMEL), feats.shape
    assert feats.dtype == jnp.float32
    assert bool(jnp.all(jnp.isfinite(feats)))
    print("KERNEL_OK")
</pallas_src>

<mosaic_0001>
module attributes {stable_mosaic.version = 11 : i64} {
  func.func @fbank_kernel(%arg0: i32, %arg1: memref<16x400xbf16, #tpu.memory_space<vmem>>, %arg2: memref<400x512xbf16, #tpu.memory_space<vmem>>, %arg3: memref<256x128xbf16, #tpu.memory_space<vmem>>, %arg4: memref<16x128xf32, #tpu.memory_space<vmem>>) attributes {dimension_semantics = [#tpu.dimension_semantics<parallel>], iteration_bounds = array<i64: 1>, scalar_prefetch = 0 : i64, scratch_operands = 0 : i64, tpu.core_type = #tpu.core_type<tc>, window_params = [{transform_indices = @transform_0, window_bounds = array<i64: 16, 400>}, {pipeline_mode = #tpu.pipeline_mode<synchronous>, transform_indices = @transform_1, window_bounds = array<i64: 400, 512>}, {pipeline_mode = #tpu.pipeline_mode<synchronous>, transform_indices = @transform_2, window_bounds = array<i64: 256, 128>}, {transform_indices = @transform_3, window_bounds = array<i64: 16, 128>}]} {
    %c0 = arith.constant 0 : index
    %c0_0 = arith.constant 0 : index
    %0 = vector.load %arg1[%c0, %c0_0] : memref<16x400xbf16, #tpu.memory_space<vmem>>, vector<16x400xbf16>
    %c0_1 = arith.constant 0 : index
    %c0_2 = arith.constant 0 : index
    %1 = vector.load %arg2[%c0_1, %c0_2] : memref<400x512xbf16, #tpu.memory_space<vmem>>, vector<400x512xbf16>
    %cst = arith.constant dense<0.000000e+00> : vector<16x512xf32>
    %2 = tpu.matmul %0, %1, %cst {dimension_numbers = #tpu.dot_dimension_numbers<[1], [0], [0], [1], [0, 0, 1, 1], [], []>} : vector<16x400xbf16>, vector<400x512xbf16>, vector<16x512xf32> -> vector<16x512xf32>
    %3 = vector.extract_strided_slice %2 {offsets = [0, 0], sizes = [16, 256], strides = [1, 1]} : vector<16x512xf32> to vector<16x256xf32>
    %4 = vector.extract_strided_slice %2 {offsets = [0, 256], sizes = [16, 256], strides = [1, 1]} : vector<16x512xf32> to vector<16x256xf32>
    %5 = arith.mulf %3, %3 : vector<16x256xf32>
    %6 = arith.mulf %4, %4 : vector<16x256xf32>
    %7 = arith.addf %5, %6 : vector<16x256xf32>
    %8 = arith.truncf %7 : vector<16x256xf32> to vector<16x256xbf16>
    %c0_3 = arith.constant 0 : index
    %c0_4 = arith.constant 0 : index
    %9 = vector.load %arg3[%c0_3, %c0_4] : memref<256x128xbf16, #tpu.memory_space<vmem>>, vector<256x128xbf16>
    %cst_5 = arith.constant dense<0.000000e+00> : vector<16x128xf32>
    %10 = tpu.matmul %8, %9, %cst_5 {dimension_numbers = #tpu.dot_dimension_numbers<[1], [0], [0], [1], [0, 0, 1, 1], [], []>} : vector<16x256xbf16>, vector<256x128xbf16>, vector<16x128xf32> -> vector<16x128xf32>
    %cst_6 = arith.constant 1.1920929E-7 : f32
    %11 = vector.broadcast %cst_6 : f32 to vector<16x128xf32>
    %12 = arith.maximumf %10, %11 : vector<16x128xf32>
    %13 = math.log %12 : vector<16x128xf32>
    %c0_7 = arith.constant 0 : index
    %c0_8 = arith.constant 0 : index
    %14 = vector.load %arg4[%c0_7, %c0_8] : memref<16x128xf32, #tpu.memory_space<vmem>>, vector<16x128xf32>
    tpu.vector_store %arg4[%c0_7, %c0_8], %13 {strides = array<i32>} : memref<16x128xf32, #tpu.memory_space<vmem>>, vector<16x128xf32>,
    return
  }
  func.func @transform_0(%arg0: i32) -> (i32, i32) {
    %c0_i32 = arith.constant 0 : i32
    %c0_i32_0 = arith.constant 0 : i32
    return %arg0, %c0_i32 : i32, i32
  }
  func.func @transform_1(%arg0: i32) -> (i32, i32) {
    %c0_i32 = arith.constant 0 : i32
    %c0_i32_0 = arith.constant 0 : i32
    %c0_i32_1 = arith.constant 0 : i32
    return %c0_i32, %c0_i32_0 : i32, i32
  }
  func.func @transform_2(%arg0: i32) -> (i32, i32) {
    %c0_i32 = arith.constant 0 : i32
    %c0_i32_0 = arith.constant 0 : i32
    %c0_i32_1 = arith.constant 0 : i32
    return %c0_i32, %c0_i32_0 : i32, i32
  }
  func.func @transform_3(%arg0: i32) -> (i32, i32) {
    %c0_i32 = arith.constant 0 : i32
    %c0_i32_0 = arith.constant 0 : i32
    return %arg0, %c0_i32 : i32, i32
  }
}

</mosaic_0001>

<bundles_post_ra>
// kernel: kaldi_fbank.1
= control target key start
LH: loop header
LB: loop body
LE: loop exit
PB: predicated region body
PF: predicated region fallthrough
CT: control target
= control target key end

     0   :  { %vm638_vm0 = vcmask 130048   ;;  %s1723_s1 = inlined_call_operand.vmem [shape: bf16[400,512], index: 1, kind: input, shape index: {}]   ;;  %s1724_s0 = inlined_call_operand.vmem [shape: bf16[16,400], index: 0, kind: input, shape index: {}]   ;;  %s1725_s2 = inlined_call_operand.vmem [shape: bf16[256,128], index: 2, kind: input, shape index: {}]   ;;  %s1726_s3 = inlined_call_operand.vmem [shape: f32[16,128], index: 3, kind: output, shape index: {}]  }
   0x1   :  { %v1161_v0 = vld [vmem:[%s1723_s1 + $0x4] ss:$16 sps:$4 sm:$0xff]   ;;  %v1163_v1 = vld [vmem:[%s1723_s1 + $0xc] ss:$16 sps:$4 sm:$0xff]   ;;  %v1165_v2 = vld [vmem:[%s1723_s1] ss:$16 sps:$4 sm:$0xff]  }
   0x2   :  { %642 = vmatprep.subr.bf16.mxu0 %v1161_v0  ;;  %v1166_v3 = vld [vmem:[%s1723_s1 + $0x8] ss:$16 sps:$4 sm:$0xff]   ;;  %728 = vmatprep.subr.bf16.mxu1 %v1163_v1  ;;  %v1167_v4 = vld [vmem:[%s1723_s1 + $0x24] ss:$16 sps:$4 sm:$0xff]   ;;  %v1169_v5 = vld [vmem:[%s1723_s1 + $0x2c] ss:$16 sps:$4 sm:$0xff]  }
   0x3   :  { %643 = vmatpush1.bf16.msra.mxu0 %v1165_v2  ;;  %729 = vmatpush1.bf16.msra.mxu1 %v1166_v3  ;;  %v1171_v6 = vld [vmem:[%s1723_s1 + $0x20] ss:$16 sps:$4 sm:$0xff]   ;;  %v1172_v7 = vld [vmem:[%s1723_s1 + $0x28] ss:$16 sps:$4 sm:$0xff]   ;;  %v1173_v8 = vld [vmem:[%s1723_s1 + $0x44] ss:$16 sps:$4 sm:$0xff]  }
   0x4   :  { %644 = vmatprep.subr.bf16.mxu0 %v1167_v4  ;;  %730 = vmatprep.subr.bf16.mxu1 %v1169_v5  ;;  %v1175_v9 = vld [vmem:[%s1723_s1 + $0x4c] ss:$16 sps:$4 sm:$0xff]   ;;  %v1177_v10 = vld [vmem:[%s1723_s1 + $0x40] ss:$16 sps:$4 sm:$0xff]   ;;  %v1178_v11 = vld [vmem:[%s1723_s1 + $0x48] ss:$16 sps:$4 sm:$0xff]  }
   0x5   :  { %v1179_v12 = vld [vmem:[%s1723_s1 + $0x64] ss:$16 sps:$4 sm:$0xff]   ;;  %v1181_v13 = vld [vmem:[%s1723_s1 + $0x6c] ss:$16 sps:$4 sm:$0xff]   ;;  %v1183_v14 = vld [vmem:[%s1723_s1 + $0x60] ss:$16 sps:$4 sm:$0xff]  }
   0x6   :  { %v1184_v15 = vld [vmem:[%s1723_s1 + $0x68] ss:$16 sps:$4 sm:$0xff]   ;;  %v1185_v16 = vld [vmem:[%s1723_s1 + $0x84] ss:$16 sps:$4 sm:$0xff]   ;;  %v1187_v17 = vld [vmem:[%s1723_s1 + $0x8c] ss:$16 sps:$4 sm:$0xff]  }
   0x7   :  { %645 = vmatpush1.bf16.msra.mxu0 %v1171_v6  ;;  %731 = vmatpush1.bf16.msra.mxu1 %v1172_v7  ;;  %v1189_v18 = vld [vmem:[%s1723_s1 + $0x80] ss:$16 sps:$4 sm:$0xff]   ;;  %v1190_v19 = vld [vmem:[%s1723_s1 + $0x88] ss:$16 sps:$4 sm:$0xff]   ;;  %v1191_v20 = vld [vmem:[%s1723_s1 + $0xa4] ss:$16 sps:$4 sm:$0xff]  }
   0x8   :  { %646 = vmatprep.subr.bf16.mxu0 %v1173_v8  ;;  %732 = vmatprep.subr.bf16.mxu1 %v1175_v9  ;;  %v1193_v21 = vld [vmem:[%s1723_s1 + $0xac] ss:$16 sps:$4 sm:$0xff]   ;;  %v1195_v22 = vld [vmem:[%s1723_s1 + $0xa0] ss:$16 sps:$4 sm:$0xff]   ;;  %v1196_v23 = vld [vmem:[%s1723_s1 + $0xa8] ss:$16 sps:$4 sm:$0xff]  }
   0x9   :  { %v1197_v24 = vld [vmem:[%s1723_s1 + $0xc4] ss:$16 sps:$4 sm:$0xff]   ;;  %v1199_v25 = vld [vmem:[%s1723_s1 + $0xcc] ss:$16 sps:$4 sm:$0xff]   ;;  %v1201_v26 = vld [vmem:[%s1723_s1 + $0xc0] ss:$16 sps:$4 sm:$0xff]  }
   0xa   :  { %v1202_v27 = vld [vmem:[%s1723_s1 + $0xc8] ss:$16 sps:$4 sm:$0xff]   ;;  %v1203_v28 = vld [vmem:[%s1723_s1 + $0xe4] ss:$16 sps:$4 sm:$0xff]   ;;  %v1205_v29 = vld [vmem:[%s1723_s1 + $0xec] ss:$16 sps:$4 sm:$0xff]  }
   0xb   :  { %647 = vmatpush1.bf16.msra.mxu0 %v1177_v10  ;;  %733 = vmatpush1.bf16.msra.mxu1 %v1178_v11  ;;  %v1207_v30 = vld [vmem:[%s1723_s1 + $0xe0] ss:$16 sps:$4 sm:$0xff]   ;;  %v1208_v31 = vld [vmem:[%s1723_s1 + $0xe8] ss:$16 sps:$4 sm:$0xff]   ;;  %v1209_v32 = vld [vmem:[%s1723_s1 + $0x104] ss:$16 sps:$4 sm:$0xff]  }
   0xc   :  { %648 = vmatprep.subr.bf16.mxu0 %v1179_v12  ;;  %734 = vmatprep.subr.bf16.mxu1 %v1181_v13  ;;  %v1211_v33 = vld [vmem:[%s1723_s1 + $0x10c] ss:$16 sps:$4 sm:$0xff]   ;;  %v1213_v34 = vld [vmem:[%s1723_s1 + $0x100] ss:$16 sps:$4 sm:$0xff]   ;;  %v1214_v35 = vld [vmem:[%s1723_s1 + $0x108] ss:$16 sps:$4 sm:$0xff]  }
   0xd   :  { %v1215_v36 = vld [vmem:[%s1723_s1 + $0x124] ss:$16 sps:$4 sm:$0xff]   ;;  %v1217_v37 = vld [vmem:[%s1723_s1 + $0x12c] ss:$16 sps:$4 sm:$0xff]   ;;  %v1219_v38 = vld [vmem:[%s1723_s1 + $0x120] ss:$16 sps:$4 sm:$0xff]  }
   0xe   :  { %v1220_v39 = vld [vmem:[%s1723_s1 + $0x128] ss:$16 sps:$4 sm:$0xff]   ;;  %v1221_v40 = vld [vmem:[%s1723_s1 + $0x144] ss:$16 sps:$4 sm:$0xff]   ;;  %v1223_v41 = vld [vmem:[%s1723_s1 + $0x14c] ss:$16 sps:$4 sm:$0xff]  }
   0xf   :  { %649 = vmatpush1.bf16.msra.mxu0 %v1183_v14  ;;  %735 = vmatpush1.bf16.msra.mxu1 %v1184_v15  ;;  %v1225_v42 = vld [vmem:[%s1723_s1 + $0x140] ss:$16 sps:$4 sm:$0xff]   ;;  %v1226_v43 = vld [vmem:[%s1723_s1 + $0x148] ss:$16 sps:$4 sm:$0xff]   ;;  %v1227_v44 = vld [vmem:[%s1723_s1 + $0x164] ss:$16 sps:$4 sm:$0xff]  }
  0x10   :  { %650 = vmatprep.subr.bf16.mxu0 %v1185_v16  ;;  %736 = vmatprep.subr.bf16.mxu1 %v1187_v17  ;;  %v1229_v45 = vld [vmem:[%s1723_s1 + $0x16c] ss:$16 sps:$4 sm:$0xff]   ;;  %v1231_v46 = vld [vmem:[%s1723_s1 + $0x160] ss:$16 sps:$4 sm:$0xff]   ;;  %v1232_v47 = vld [vmem:[%s1723_s1 + $0x168] ss:$16 sps:$4 sm:$0xff]  }
  0x11   :  { %v1259_v48 = vld [vmem:[%s1724_s0 + $0x4] ss:$16 sps:$4 sm:$0xff]   ;;  %v1235_v50 = vld [vmem:[%s1723_s1 + $0x18c] ss:$16 sps:$4 sm:$0xff]   ;;  %v1237_v51 = vld [vmem:[%s1723_s1 + $0x180] ss:$16 sps:$4 sm:$0xff]  }
  0x12   :  { %v1233_v49 = vld [vmem:[%s1723_s1 + $0x184] ss:$16 sps:$4 sm:$0xff]   ;;  %674 = vmatprep.mubr.bf16.mxu0 %v1259_v48  ;;  %760 = vmatprep.mubr.bf16.mxu1 %v1259_v48  ;;  %v1238_v52 = vld [vmem:[%s1723_s1 + $0x188] ss:$16 sps:$4 sm:$0xff]   ;;  %v1241_v54 = vld [vmem:[%s1723_s1 + $0x1ac] ss:$16 sps:$4 sm:$0xff]  }
  0x13   :  { %651 = vmatpush1.bf16.msra.mxu0 %v1189_v18  ;;  %737 = vmatpush1.bf16.msra.mxu1 %v1190_v19  ;;  %v1239_v53 = vld [vmem:[%s1723_s1 + $0x1a4] ss:$16 sps:$4 sm:$0xff]   ;;  %v1243_v55 = vld [vmem:[%s1723_s1 + $0x1a0] ss:$16 sps:$4 sm:$0xff]   ;;  %v1244_v56 = vld [vmem:[%s1723_s1 + $0x1a8] ss:$16 sps:$4 sm:$0xff]  }
  0x14   :  { %652 = vmatprep.subr.bf16.mxu0 %v1191_v20  ;;  %738 = vmatprep.subr.bf16.mxu1 %v1193_v21  ;;  %v1245_v57 = vld [vmem:[%s1723_s1 + $0x1c4] ss:$16 sps:$4 sm:$0xff]   ;;  %v1247_v58 = vld [vmem:[%s1723_s1 + $0x1cc] ss:$16 sps:$4 sm:$0xff]   ;;  %v1249_v59 = vld [vmem:[%s1723_s1 + $0x1c0] ss:$16 sps:$4 sm:$0xff]  }
  0x15   :  { %v1250_v60 = vld [vmem:[%s1723_s1 + $0x1c8] ss:$16 sps:$4 sm:$0xff]   ;;  %v1251_v61 = vld [vmem:[%s1723_s1 + $0x1e4] ss:$16 sps:$4 sm:$0xff]   ;;  %v1253_v62 = vld [vmem:[%s1723_s1 + $0x1ec] ss:$16 sps:$4 sm:$0xff]  }
  0x16   :  { %v1255_v63 = vld [vmem:[%s1723_s1 + $0x1e0] ss:$16 sps:$4 sm:$0xff]   ;;  %v1256_v0 = vld [vmem:[%s1723_s1 + $0x1e8] ss:$16 sps:$4 sm:$0xff]   ;;  %v1262_v1 = vld [vmem:[%s1723_s1 + $0x204] ss:$16 sps:$4 sm:$0xff]  }
  0x17   :  { %653 = vmatpush1.bf16.msra.mxu0 %v1195_v22  ;;  %739 = vmatpush1.bf16.msra.mxu1 %v1196_v23  ;;  %v1265_v2 = vld [vmem:[%s1723_s1 + $0x20c] ss:$16 sps:$4 sm:$0xff]   ;;  %v1257_v3 = vld [vmem:[%s1724_s0] ss:$16 sps:$4 sm:$0xff]   ;;  %v1263_v5 = vld [vmem:[%s1723_s1 + $0x208] ss:$16 sps:$4 sm:$0xff]  }
  0x18   :  { %654 = vmatprep.subr.bf16.mxu0 %v1197_v24  ;;  %740 = vmatprep.subr.bf16.mxu1 %v1199_v25  ;;  %v1260_v4 = vld [vmem:[%s1723_s1 + $0x200] ss:$16 sps:$4 sm:$0xff]   ;;  %v1268_v6 = vld [vmem:[%s1723_s1 + $0x224] ss:$16 sps:$4 sm:$0xff]   ;;  %v1271_v7 = vld [vmem:[%s1723_s1 + $0x22c] ss:$16 sps:$4 sm:$0xff]  }
  0x19   :  { %v1266_v8 = vld [vmem:[%s1723_s1 + $0x220] ss:$16 sps:$4 sm:$0xff]   ;;  %v1269_v9 = vld [vmem:[%s1723_s1 + $0x228] ss:$16 sps:$4 sm:$0xff]   ;;  %v1274_v10 = vld [vmem:[%s1723_s1 + $0x244] ss:$16 sps:$4 sm:$0xff]  }
  0x1a   :  { %v1314_v11 = vld [vmem:[%s1724_s0 + $0xc] ss:$16 sps:$4 sm:$0xff]   ;;  %v1272_v13 = vld [vmem:[%s1723_s1 + $0x240] ss:$16 sps:$4 sm:$0xff]   ;;  %v1275_v14 = vld [vmem:[%s1723_s1 + $0x248] ss:$16 sps:$4 sm:$0xff]  }
  0x1b   :  { %655 = vmatpush1.bf16.msra.mxu0 %v1201_v26  ;;  %741 = vmatpush1.bf16.msra.mxu1 %v1202_v27  ;;  %v1277_v12 = vld [vmem:[%s1723_s1 + $0x24c] ss:$16 sps:$4 sm:$0xff]   ;;  %v1280_v15 = vld [vmem:[%s1723_s1 + $0x264] ss:$16 sps:$4 sm:$0xff]   ;;  %v1278_v17 = vld [vmem:[%s1723_s1 + $0x260] ss:$16 sps:$4 sm:$0xff]  }
  0x1c   :  { %656 = vmatprep.subr.bf16.mxu0 %v1203_v28  ;;  %742 = vmatprep.subr.bf16.mxu1 %v1205_v29  ;;  %v1283_v16 = vld [vmem:[%s1723_s1 + $0x26c] ss:$16 sps:$4 sm:$0xff]   ;;  %v1281_v18 = vld [vmem:[%s1723_s1 + $0x268] ss:$16 sps:$4 sm:$0xff]   ;;  %v1286_v19 = vld [vmem:[%s1723_s1 + $0x284] ss:$16 sps:$4 sm:$0xff]  }
  0x1d   :  { %v1289_v20 = vld [vmem:[%s1723_s1 + $0x28c] ss:$16 sps:$4 sm:$0xff]   ;;  %v1284_v21 = vld [vmem:[%s1723_s1 + $0x280] ss:$16 sps:$4 sm:$0xff]   ;;  %v1287_v22 = vld [vmem:[%s1723_s1 + $0x288] ss:$16 sps:$4 sm:$0xff]  }
  0x1e   :  { %v1292_v23 = vld [vmem:[%s1723_s1 + $0x2a4] ss:$16 sps:$4 sm:$0xff]   ;;  %v1295_v24 = vld [vmem:[%s1723_s1 + $0x2ac] ss:$16 sps:$4 sm:$0xff]   ;;  %v1290_v25 = vld [vmem:[%s1723_s1 + $0x2a0] ss:$16 sps:$4 sm:$0xff]  }
  0x1f   :  { %657 = vmatpush1.bf16.msra.mxu0 %v1207_v30  ;;  %743 = vmatpush1.bf16.msra.mxu1 %v1208_v31  ;;  %v1293_v26 = vld [vmem:[%s1723_s1 + $0x2a8] ss:$16 sps:$4 sm:$0xff]   ;;  %v1298_v27 = vld [vmem:[%s1723_s1 + $0x2c4] ss:$16 sps:$4 sm:$0xff]   ;;  %v1301_v28 = vld [vmem:[%s1723_s1 + $0x2cc] ss:$16 sps:$4 sm:$0xff]  }
  0x20   :  { %658 = vmatprep.subr.bf16.mxu0 %v1209_v32  ;;  %744 = vmatprep.subr.bf16.mxu1 %v1211_v33  ;;  %v1296_v29 = vld [vmem:[%s1723_s1 + $0x2c0] ss:$16 sps:$4 sm:$0xff]   ;;  %v1299_v30 = vld [vmem:[%s1723_s1 + $0x2c8] ss:$16 sps:$4 sm:$0xff]   ;;  %v1304_v31 = vld [vmem:[%s1723_s1 + $0x2e4] ss:$16 sps:$4 sm:$0xff]  }
  0x21   :  { %v1307_v32 = vld [vmem:[%s1723_s1 + $0x2ec] ss:$16 sps:$4 sm:$0xff]   ;;  %v1302_v33 = vld [vmem:[%s1723_s1 + $0x2e0] ss:$16 sps:$4 sm:$0xff]  }
  0x22   :  { %v1325_v48 = vld [vmem:[%s1725_s2 + $0x60] sm:$0xff]  }
  0x23   :  { %659 = vmatpush1.bf16.msra.mxu0 %v1213_v34  ;;  %745 = vmatpush1.bf16.msra.mxu1 %v1214_v35  ;;  %v1305_v34 = vld [vmem:[%s1723_s1 + $0x2e8] ss:$16 sps:$4 sm:$0xff]   ;;  %v1310_v35 = vld [vmem:[%s1723_s1 + $0x304] ss:$16 sps:$4 sm:$0xff]  }
  0x24   :  { %660 = vmatprep.subr.bf16.mxu0 %v1215_v36  ;;  %746 = vmatprep.subr.bf16.mxu1 %v1217_v37  ;;  %v1313_v36 = vld [vmem:[%s1723_s1 + $0x30c] ss:$16 sps:$4 sm:$0xff]   ;;  %v1308_v37 = vld [vmem:[%s1723_s1 + $0x300] ss:$16 sps:$4 sm:$0xff]  }
  0x27   :  { %661 = vmatpush1.bf16.msra.mxu0 %v1219_v38  ;;  %747 = vmatpush1.bf16.msra.mxu1 %v1220_v39  ;;  %v1311_v38 = vld [vmem:[%s1723_s1 + $0x308] ss:$16 sps:$4 sm:$0xff]   ;;  %v1317_v39 = vld [vmem:[%s1725_s2 + $0x40] sm:$0xff]  }
  0x28   :  { %662 = vmatprep.subr.bf16.mxu0 %v1221_v40  ;;  %748 = vmatprep.subr.bf16.mxu1 %v1223_v41  ;;  %v1316_v40 = vld [vmem:[%s1724_s0 + $0x8] ss:$16 sps:$4 sm:$0xff]   ;;  %v1318_v41 = vld [vmem:[%s1725_s2] sm:$0xff]  }
  0x2b   :  { %663 = vmatpush1.bf16.msra.mxu0 %v1225_v42  ;;  %749 = vmatpush1.bf16.msra.mxu1 %v1226_v43  ;;  %v1319_v42 = vld [vmem:[%s1725_s2 + $0x48] sm:$0xff]  }
  0x2c   :  { %664 = vmatprep.subr.bf16.mxu0 %v1227_v44  ;;  %750 = vmatprep.subr.bf16.mxu1 %v1229_v45  ;;  %v1320_v43 = vld [vmem:[%s1725_s2 + $0x8] sm:$0xff]   ;;  %v1321_v44 = vld [vmem:[%s1725_s2 + $0x50] sm:$0xff]  }
  0x2d   :  { %v1322_v45 = vld [vmem:[%s1725_s2 + $0x10] sm:$0xff]  }
  0x2f   :  { %665 = vmatpush1.bf16.msra.mxu0 %v1231_v46  ;;  %751 = vmatpush1.bf16.msra.mxu1 %v1232_v47  ;;  %v1323_v46 = vld [vmem:[%s1725_s2 + $0x58] sm:$0xff]  }
  0x30   :  { %666 = vmatprep.subr.bf16.mxu0 %v1233_v49  ;;  %752 = vmatprep.subr.bf16.mxu1 %v1235_v50  ;;  %v1324_v47 = vld [vmem:[%s1725_s2 + $0x18] sm:$0xff]   ;;  %v1326_v49 = vld [vmem:[%s1725_s2 + $0x20] sm:$0xff]   ;;  %v1327_v50 = vld [vmem:[%s1725_s2 + $0x68] sm:$0xff]  }
  0x33   :  { %667 = vmatpush1.bf16.msra.mxu0 %v1237_v51  ;;  %753 = vmatpush1.bf16.msra.mxu1 %v1238_v52  ;;  %v1328_v51 = vld [vmem:[%s1725_s2 + $0x28] sm:$0xff]   ;;  %v1329_v52 = vld [vmem:[%s1725_s2 + $0x70] sm:$0xff]  }
  0x34   :  { %668 = vmatprep.subr.bf16.mxu0 %v1239_v53  ;;  %754 = vmatprep.subr.bf16.mxu1 %v1241_v54  ;;  %v1330_v53 = vld [vmem:[%s1725_s2 + $0x30] sm:$0xff]   ;;  %v1331_v54 = vld [vmem:[%s1725_s2 + $0x78] sm:$0xff]  }
  0x37   :  { %669 = vmatpush1.bf16.msra.mxu0 %v1243_v55  ;;  %755 = vmatpush1.bf16.msra.mxu1 %v1244_v56  ;;  %v1332_v55 = vld [vmem:[%s1725_s2 + $0x38] sm:$0xff]  }
  0x38   :  { %670 = vmatprep.subr.bf16.mxu0 %v1245_v57  ;;  %756 = vmatprep.subr.bf16.mxu1 %v1247_v58 }
  0x3b   :  { %671 = vmatpush1.bf16.msra.mxu0 %v1249_v59  ;;  %757 = vmatpush1.bf16.msra.mxu1 %v1250_v60 }
  0x3c   :  { %672 = vmatprep.subr.bf16.mxu0 %v1251_v61  ;;  %758 = vmatprep.subr.bf16.mxu1 %v1253_v62 }
  0x3f   :  { %673 = vmatpush1.bf16.msra.mxu0 %v1255_v63  ;;  %759 = vmatpush1.bf16.msra.mxu1 %v1256_v0 }
  0x40   :  { %685 = vmatprep.subr.bf16.mxu0 %v1262_v1  ;;  %771 = vmatprep.subr.bf16.mxu1 %v1265_v2 }
  0x42   :  { %675 = vmatmul.mubr.bf16.vlgmr.msra.gmra.mrb[0].mxu0 %v1257_v3  ;;  %761 = vmatmul.mubr.bf16.vlgmr.msra.gmra.mrb[0].mxu1 %v1257_v3 }
  0x43   :  { %686 = vmatpush1.bf16.msra.mxu0 %v1260_v4  ;;  %772 = vmatpush1.bf16.msra.mxu1 %v1263_v5 }
  0x44   :  { %687 = vmatprep.subr.bf16.mxu0 %v1268_v6  ;;  %773 = vmatprep.subr.bf16.mxu1 %v1271_v7 }
  0x45   :  { %1113 = vmatprep.mubr.msk.bf16.mxu0 %vm638_vm0, %v1314_v11  ;;  %1114 = vmatprep.mubr.msk.bf16.mxu1 %vm638_vm0, %v1314_v11 }
  0x47   :  { %688 = vmatpush1.bf16.msra.mxu0 %v1266_v8  ;;  %774 = vmatpush1.bf16.msra.mxu1 %v1269_v9 }
  0x48   :  { %689 = vmatprep.subr.bf16.mxu0 %v1274_v10  ;;  %775 = vmatprep.subr.bf16.mxu1 %v1277_v12 }
  0x4b   :  { %690 = vmatpush1.bf16.msra.mxu0 %v1272_v13  ;;  %776 = vmatpush1.bf16.msra.mxu1 %v1275_v14 }
  0x4c   :  { %691 = vmatprep.subr.bf16.mxu0 %v1280_v15  ;;  %777 = vmatprep.subr.bf16.mxu1 %v1283_v16 }
  0x4f   :  { %692 = vmatpush1.bf16.msra.mxu0 %v1278_v17  ;;  %778 = vmatpush1.bf16.msra.mxu1 %v1281_v18 }
  0x50   :  { %693 = vmatprep.subr.bf16.mxu0 %v1286_v19  ;;  %779 = vmatprep.subr.bf16.mxu1 %v1289_v20 }
  0x53   :  { %694 = vmatpush1.bf16.msra.mxu0 %v1284_v21  ;;  %780 = vmatpush1.bf16.msra.mxu1 %v1287_v22 }
  0x54   :  { %695 = vmatprep.subr.bf16.mxu0 %v1292_v23  ;;  %781 = vmatprep.subr.bf16.mxu1 %v1295_v24 }
  0x57   :  { %696 = vmatpush1.bf16.msra.mxu0 %v1290_v25  ;;  %782 = vmatpush1.bf16.msra.mxu1 %v1293_v26 }
  0x58   :  { %697 = vmatprep.subr.bf16.mxu0 %v1298_v27  ;;  %783 = vmatprep.subr.bf16.mxu1 %v1301_v28 }
  0x5b   :  { %698 = vmatpush1.bf16.msra.mxu0 %v1296_v29  ;;  %784 = vmatpush1.bf16.msra.mxu1 %v1299_v30 }
  0x5c   :  { %699 = vmatprep.subr.bf16.mxu0 %v1304_v31  ;;  %785 = vmatprep.subr.bf16.mxu1 %v1307_v32 }
  0x5f   :  { %700 = vmatpush1.bf16.msra.mxu0 %v1302_v33  ;;  %786 = vmatpush1.bf16.msra.mxu1 %v1305_v34 }
  0x60   :  { %701 = vmatprep.subr.bf16.mxu0 %v1310_v35  ;;  %787 = vmatprep.subr.bf16.mxu1 %v1313_v36 }
  0x63   :  { %702 = vmatpush1.bf16.msra.mxu0 %v1308_v37  ;;  %788 = vmatpush1.bf16.msra.mxu1 %v1311_v38 }
  0x64   :  { %1131 = vmatprep.subr.bf16.mxu0 %v1317_v39 }
  0x66   :  { %718 = vmatmul.mubr.bf16.vlgmr.msra.gmra.mrb[0].mxu0 %v1316_v40  ;;  %804 = vmatmul.mubr.bf16.vlgmr.msra.gmra.mrb[0].mxu1 %v1316_v40 }
  0x67   :  { %1132 = vmatpush3.bf16.msra.mxu0 %v1318_v41 }
  0x68   :  { %1133 = vmatprep.subr.bf16.mxu0 %v1319_v42 }
  0x6b   :  { %1134 = vmatpush3.bf16.msra.mxu0 %v1320_v43 }
  0x6c   :  { %1135 = vmatprep.subr.bf16.mxu0 %v1321_v44 }
  0x6f   :  { %1136 = vmatpush3.bf16.msra.mxu0 %v1322_v45 }
  0x70   :  { %1137 = vmatprep.subr.bf16.mxu0 %v1323_v46 }
  0x73   :  { %1138 = vmatpush3.bf16.msra.mxu0 %v1324_v47 }
  0x74   :  { %1139 = vmatprep.subr.bf16.mxu0 %v1325_v48 }
  0x77   :  { %1140 = vmatpush3.bf16.msra.mxu0 %v1326_v49 }
  0x78   :  { %1141 = vmatprep.subr.bf16.mxu0 %v1327_v50 }
  0x7b   :  { %1142 = vmatpush3.bf16.msra.mxu0 %v1328_v51 }
  0x7c   :  { %1143 = vmatprep.subr.bf16.mxu0 %v1329_v52 }
  0x7f   :  { %1144 = vmatpush3.bf16.msra.mxu0 %v1330_v53 }
  0x80   :  { %1145 = vmatprep.subr.bf16.mxu0 %v1331_v54 }
  0x83   :  { %1146 = vmatpush3.bf16.msra.mxu0 %v1332_v55 }
 0x139   :  { %v719_v56 = vpop.f32.mrb[0].mxu0  ;;  %v805_v57 = vpop.f32.mrb[0].mxu1 }
 0x13a   :  { %v814_v58 = vmul.f32 %v719_v56, %v719_v56  ;;  %v818_v59 = vmul.f32 %v805_v57, %v805_v57  ;;  %v721_v60 = vpop.f32.mrb[1].mxu0  ;;  %v807_v61 = vpop.f32.mrb[1].mxu1 }
 0x13b   :  { %v815_v62 = vmul.f32 %v721_v60, %v721_v60  ;;  %v819_v63 = vmul.f32 %v807_v61, %v807_v61  ;;  %v723_v0 = vpop.f32.mrb[2].mxu0  ;;  %v809_v1 = vpop.f32.mrb[2].mxu1 }
 0x13c   :  { %v822_v2 = vadd.f32 %v818_v59, %v814_v58  ;;  %v816_v3 = vmul.f32 %v723_v0, %v723_v0  ;;  %v820_v4 = vmul.f32 %v809_v1, %v809_v1  ;;  %v725_v5 = vpop.f32.mrb[3].mxu0  ;;  %v811_v6 = vpop.f32.mrb[3].mxu1 }
 0x13d   :  { %v823_v7 = vadd.f32 %v819_v63, %v815_v62  ;;  %v817_v8 = vmul.f32 %v725_v5, %v725_v5  ;;  %v821_v9 = vmul.f32 %v811_v6, %v811_v6 }
 0x13e   :  { %v824_v10 = vadd.f32 %v820_v4, %v816_v3 }
 0x13f   :  { %v825_v11 = vadd.f32 %v821_v9, %v817_v8 }
 0x140   :  { %v826_v12 = vpack.c.bf16 %v824_v10, %v822_v2 }
 0x141   :  { %v827_v13 = vpack.c.bf16 %v825_v11, %v823_v7 }
 0x143   :  { %988 = vmatprep.mubr.bf16.mxu0 %v827_v13 }
 0x144   :  { %989 = vmatmul.mubr.bf16.vlgmr.msra.gmra.mrb[4].mxu0 %v826_v12 }
 0x217   :  { %v1147_v14 = vpop.f32.mrb[4].mxu0 }
 0x218   :  { %v1148_v15 = vpop.f32.mrb[5].mxu0 }
 0x219   :  { %v1149_v16 = vadd.f32 %v1148_v15, %v1147_v14  ;;  %v1150_v17 = vpop.f32.mrb[6].mxu0 }
 0x21a   :  { %v1151_v18 = vpop.f32.mrb[7].mxu0 }
 0x21b   :  { %v997_v19 = vmax.f32 %v1149_v16, 1.1920929e-07  ;;  %v1152_v20 = vadd.f32 %v1151_v18, %v1150_v17 }
 0x21d   :  { %1333 = vlog2.f32 %v997_v19  ;;  %v998_v21 = vmax.f32 %v1152_v20, 1.1920929e-07 }
 0x21f   :  { %1335 = vlog2.f32 %v998_v21 }
 0x227   :  { %v1334_v22 = vpop.eup %1333 }
 0x228   :  { %v1000_v23 = vmul.f32 0.6931472, %v1334_v22 }
 0x229   :  { %v1336_v24 = vpop.eup %1335 }
 0x22a   :  { %1003 = vst [vmem:[%s1726_s3] sm:$0xff] %v1000_v23  ;;  %v1002_v25 = vmul.f32 0.6931472, %v1336_v24 }
 0x22c   :  { %1004 = vst [vmem:[%s1726_s3 + $0x8] sm:$0xff] %v1002_v25 }

</bundles_post_ra>
